<compile_context>
chip_gen: v7x
topology: tpu7x:2x2x1
jax: 0.10.0
libtpu: 0.0.40
codegen_flags: <defaults>
</compile_context>

<pallas_src>
import functools

import jax
import jax.numpy as jnp
from jax.experimental import pallas as pl
from jax.experimental.pallas import tpu as pltpu


def _cdiv(a, b):
    return -(-a // b)


def _round_up(a, b):
    return _cdiv(a, b) * b


def _vmem_limit_bytes():
    """Generation-aware VMEM limit: ~75% of per-core VMEM, capped at 96 MiB."""
    try:
        cap = int(pltpu.get_tpu_info().vmem_capacity_bytes)
    except Exception:
        cap = 64 * 1024 * 1024  # conservative (v7x-sized) fallback
    return int(min(cap * 3 // 4, 96 * 1024 * 1024))


def _conv_mm_relu_kernel(x_ref, w_ref, b_ref, o_ref):
    # x_ref: (K, ts)     transposed-im2col tile (compute dtype, e.g. bf16)
    # w_ref: (Cout, K)   flattened conv weight (grid-invariant, stays resident)
    # b_ref: (Cout, 1)   f32 bias column
    # o_ref: (Cout, ts)  f32 output tile (lane-dense; ragged tail is masked)
    acc = jnp.dot(w_ref[...], x_ref[...], preferred_element_type=jnp.float32)
    acc = acc + b_ref[...]
    o_ref[...] = jnp.maximum(acc, 0.0).astype(o_ref.dtype)


@functools.partial(jax.jit, static_argnames=("stride", "compute_dtype"))
def downsampling_conv_block(x, weight, bias, *, stride=2,
                            compute_dtype=jnp.bfloat16):
    """Forward pass of DownsamplingConvBlock(normalization='none').

    x:      (N, Cin, D, H, W)     float32 (NCDHW, PyTorch convention)
    weight: (Cout, Cin, 2, 2, 2)  PyTorch Conv3d weight layout
    bias:   (Cout,)
    returns (N, Cout, D//2, H//2, W//2) in x.dtype
    """
    assert stride == 2, "kernel specialized for kernel_size=stride=2, padding=0"
    out_dtype = x.dtype
    N, Cin, D, H, W = x.shape
    Cout = weight.shape[0]
    Do, Ho, Wo = D // 2, H // 2, W // 2
    K = Cin * 8          # contraction dim, ordered (ci, kd, kh, kw)
    S = Do * Ho * Wo     # output spatial size per batch element

    # Odd spatial dims: VALID stride-2/kernel-2 conv ignores the trailing
    # row/col/slice (same as PyTorch with padding=0); crop so the 2x2x2
    # reshape below is exact.
    if (D, H, W) != (2 * Do, 2 * Ho, 2 * Wo):
        x = x[:, :, :2 * Do, :2 * Ho, :2 * Wo]

    # MXU-friendly compute dtype; the convert fuses into the im2col transpose,
    # halving both its HBM write and the kernel's input DMA bytes.
    x = x.astype(compute_dtype)

    # ---- im2col (transposed): (N, Cin, 2Do, 2Ho, 2Wo) -> (N, K, S) ----------
    xp = x.reshape(N, Cin, Do, 2, Ho, 2, Wo, 2)
    xp = jnp.transpose(xp, (0, 1, 3, 5, 7, 2, 4, 6))  # (N,Cin,kd,kh,kw,Do,Ho,Wo)
    patches_t = xp.reshape(N, K, S)

    w2 = weight.reshape(Cout, K).astype(compute_dtype)
    b_col = bias.reshape(Cout, 1).astype(jnp.float32)

    # ---- spatial tile: as large as fits the generation-aware VMEM budget ----
    itemsize = patches_t.dtype.itemsize
    vmem_limit = _vmem_limit_bytes()
    tile_budget = (vmem_limit * 3) // 5                   # headroom for scratch
    resident = 2 * (Cout * K * itemsize + Cout * 4)       # weight+bias, 2 bufs
    per_col = 2 * (K * itemsize + Cout * 4)               # in+out col, 2 bufs
    avail = max(tile_budget - resident, 1024 * 1024)
    ts_cap = max(128, (avail // per_col) // 128 * 128)

    if S <= ts_cap:
        if N == 1 and S >= 256:
            # >= 2 spatial tiles so both TensorCores (v7x megacore) get work.
            ts = _round_up(_cdiv(S, 2), 128)
        else:
            ts = S                     # full dim (any size) in one tile
    else:
        ts = ts_cap                    # multiple of 128; last tile may be ragged
    num_tiles = _cdiv(S, ts)

    cost = pl.CostEstimate(
        flops=2 * N * Cout * K * S,
        transcendentals=0,
        bytes_accessed=(N * K * S * itemsize + Cout * K * itemsize + Cout * 4
                        + N * Cout * S * out_dtype.itemsize),
    )

    out_flat = pl.pallas_call(
        _conv_mm_relu_kernel,
        out_shape=jax.ShapeDtypeStruct((N, Cout, S), out_dtype),
        grid_spec=pltpu.PrefetchScalarGridSpec(
            num_scalar_prefetch=0,
            grid=(N, num_tiles),
            in_specs=[
                pl.BlockSpec((None, K, ts), lambda n, j: (n, 0, j)),
                pl.BlockSpec((Cout, K), lambda n, j: (0, 0)),
                pl.BlockSpec((Cout, 1), lambda n, j: (0, 0)),
            ],
            out_specs=pl.BlockSpec((None, Cout, ts), lambda n, j: (n, 0, j)),
        ),
        compiler_params=pltpu.CompilerParams(
            dimension_semantics=("parallel", "parallel"),
            vmem_limit_bytes=vmem_limit,
        ),
        cost_estimate=cost,
    )(patches_t, w2, b_col)

    # (N, Cout, S) -> (N, Cout, Do, Ho, Wo): pure reshape, no HBM transpose.
    return out_flat.reshape(N, Cout, Do, Ho, Wo)


def _reference(x, weight, bias):
    # pure-JAX reference using lax conv for verification
    y = jax.lax.conv_general_dilated(
        x, weight,
        window_strides=(2, 2, 2),
        padding="VALID",
        dimension_numbers=("NCDHW", "OIDHW", "NCDHW"),
    )
    y = y + bias.reshape(1, -1, 1, 1, 1)
    return jnp.maximum(y, 0.0)


if __name__ == "__main__":
    key = jax.random.PRNGKey(0)

    # (N, Cin, Cout, D, H, W):
    #  - even dims, S = 512 (one full lane tile per batch element)
    #  - odd dims  -> crop path, small S, single tile
    #  - N = 1, S = 576 -> megacore split into 2 tiles + ragged masked final store
    cases = [
        (2, 4, 8, 16, 16, 16),
        (1, 4, 8, 10, 9, 12),
        (1, 4, 8, 16, 16, 18),
    ]

    for (N, Cin, Cout, D, H, W) in cases:
        key, kx, kw_, kb = jax.random.split(key, 4)
        x = jax.random.normal(kx, (N, Cin, D, H, W), dtype=jnp.float32)
        fan_in = Cin * 2 * 2 * 2
        weight = jax.random.normal(
            kw_, (Cout, Cin, 2, 2, 2), dtype=jnp.float32) / jnp.sqrt(fan_in)
        bias = jax.random.normal(kb, (Cout,), dtype=jnp.float32) * 0.1

        ref = _reference(x, weight, bias)

        # exact path: f32 MXU inputs, must match the f32 reference tightly.
        out_f32 = jax.block_until_ready(
            downsampling_conv_block(x, weight, bias, compute_dtype=jnp.float32))
        assert out_f32.shape == ref.shape, (out_f32.shape, ref.shape)
        assert jnp.allclose(out_f32, ref, atol=1e-4, rtol=1e-5), "f32 path mismatch"

        # default fast path: bf16 MXU inputs + f32 accumulation; compare against
        # a reference fed the same bf16-rounded inputs so only the accumulation
        # differs (rounding of the inputs is the intended precision change).
        ref_bf16 = _reference(
            x.astype(jnp.bfloat16).astype(jnp.float32),
            weight.astype(jnp.bfloat16).astype(jnp.float32),
            bias)
        out = jax.block_until_ready(downsampling_conv_block(x, weight, bias))
        assert out.shape == ref.shape, (out.shape, ref.shape)
        assert jnp.allclose(out, ref_bf16, atol=2e-2, rtol=2e-2), "bf16 path mismatch"

    print("KERNEL_OK")
</pallas_src>

<mosaic_0001>
module attributes {stable_mosaic.version = 11 : i64} {
  func.func @_conv_mm_relu_kernel(%arg0: i32, %arg1: i32, %arg2: memref<1x32x512xf32, #tpu.memory_space<vmem>>, %arg3: memref<8x32xf32, #tpu.memory_space<vmem>>, %arg4: memref<8x1xf32, #tpu.memory_space<vmem>>, %arg5: memref<1x8x512xf32, #tpu.memory_space<vmem>>) attributes {dimension_semantics = [#tpu.dimension_semantics<parallel>, #tpu.dimension_semantics<parallel>], iteration_bounds = array<i64: 2, 1>, scalar_prefetch = 0 : i64, scratch_operands = 0 : i64, tpu.core_type = #tpu.core_type<tc>, window_params = [{transform_indices = @transform_0, window_bounds = array<i64: 1, 32, 512>}, {pipeline_mode = #tpu.pipeline_mode<synchronous>, transform_indices = @transform_1, window_bounds = array<i64: 8, 32>}, {pipeline_mode = #tpu.pipeline_mode<synchronous>, transform_indices = @transform_2, window_bounds = array<i64: 8, 1>}, {transform_indices = @transform_3, window_bounds = array<i64: 1, 8, 512>}]} {
    %c0 = arith.constant 0 : index
    %c0_0 = arith.constant 0 : index
    %0 = vector.load %arg3[%c0, %c0_0] : memref<8x32xf32, #tpu.memory_space<vmem>>, vector<8x32xf32>
    %c0_1 = arith.constant 0 : index
    %c0_2 = arith.constant 0 : index
    %c0_3 = arith.constant 0 : index
    %1 = vector.load %arg2[%c0_1, %c0_2, %c0_3] : memref<1x32x512xf32, #tpu.memory_space<vmem>>, vector<1x32x512xf32>
    %2 = vector.shape_cast %1 : vector<1x32x512xf32> to vector<32x512xf32>
    %cst = arith.constant dense<0.000000e+00> : vector<8x512xf32>
    %3 = tpu.matmul %0, %2, %cst {dimension_numbers = #tpu.dot_dimension_numbers<[1], [0], [0], [1], [0, 0, 1, 1], [], []>} : vector<8x32xf32>, vector<32x512xf32>, vector<8x512xf32> -> vector<8x512xf32>
    %c0_4 = arith.constant 0 : index
    %c0_5 = arith.constant 0 : index
    %4 = vector.load %arg4[%c0_4, %c0_5] : memref<8x1xf32, #tpu.memory_space<vmem>>, vector<8x1xf32>
    %5 = vector.broadcast %4 : vector<8x1xf32> to vector<8x512xf32>
    %6 = arith.addf %3, %5 : vector<8x512xf32>
    %cst_6 = arith.constant 0.000000e+00 : f32
    %7 = vector.broadcast %cst_6 : f32 to vector<8x512xf32>
    %8 = arith.maximumf %6, %7 : vector<8x512xf32>
    %c0_7 = arith.constant 0 : index
    %c0_8 = arith.constant 0 : index
    %c0_9 = arith.constant 0 : index
    %9 = vector.load %arg5[%c0_7, %c0_8, %c0_9] : memref<1x8x512xf32, #tpu.memory_space<vmem>>, vector<1x8x512xf32>
    %10 = vector.shape_cast %9 : vector<1x8x512xf32> to vector<8x512xf32>
    %11 = vector.shape_cast %8 : vector<8x512xf32> to vector<1x8x512xf32>
    tpu.vector_store %arg5[%c0_7, %c0_8, %c0_9], %11 {strides = array<i32>} : memref<1x8x512xf32, #tpu.memory_space<vmem>>, vector<1x8x512xf32>,
    return
  }
  func.func @transform_0(%arg0: i32, %arg1: i32) -> (i32, i32, i32) {
    %c0_i32 = arith.constant 0 : i32
    %c0_i32_0 = arith.constant 0 : i32
    return %arg0, %c0_i32, %arg1 : i32, i32, i32
  }
  func.func @transform_1(%arg0: i32, %arg1: i32) -> (i32, i32) {
    %c0_i32 = arith.constant 0 : i32
    %c0_i32_0 = arith.constant 0 : i32
    %c0_i32_1 = arith.constant 0 : i32
    return %c0_i32, %c0_i32_0 : i32, i32
  }
  func.func @transform_2(%arg0: i32, %arg1: i32) -> (i32, i32) {
    %c0_i32 = arith.constant 0 : i32
    %c0_i32_0 = arith.constant 0 : i32
    %c0_i32_1 = arith.constant 0 : i32
    return %c0_i32, %c0_i32_0 : i32, i32
  }
  func.func @transform_3(%arg0: i32, %arg1: i32) -> (i32, i32, i32) {
    %c0_i32 = arith.constant 0 : i32
    %c0_i32_0 = arith.constant 0 : i32
    return %arg0, %c0_i32, %arg1 : i32, i32, i32
  }
}

</mosaic_0001>

<bundles_post_ra>
// kernel: downsampling_conv_block.1
= control target key start
LH: loop header
LB: loop body
LE: loop exit
PB: predicated region body
PF: predicated region fallthrough
CT: control target
= control target key end

     0   :  { %s578_s12 = smov 0   ;;  %s580_s13 = smov 0   ;;  %s621_s0 = inlined_call_operand.vmem [shape: f32[2,32,512], index: 0, kind: input, shape index: {}]   ;;  %s622_s1 = inlined_call_operand.vmem [shape: f32[8,32], index: 1, kind: input, shape index: {}]   ;;  %s623_s2 = inlined_call_operand.vmem [shape: f32[8,1], index: 2, kind: input, shape index: {}]   ;;  %s624_s3 = inlined_call_operand.vmem [shape: f32[2,8,512], index: 3, kind: output, shape index: {}]  }
   0x1   :  { %s582_s14 = smov 0  }
   0x2 LB: > { %s25_s15 = sadd.s32 1, %s550_s13  ;;  %p478_p0 = scmp.ge.s32.totalorder %s554_s14, 1  ;;  %s554_s14 = sphi %s582_s14, %s13_s14   ;;  %s550_s13 = sphi %s580_s13, %s626_s13   ;;  %s546_s12 = sphi %s578_s12, %s625_s12  }
   0x3   : > { %p27_p1 = scmp.ge.s32.totalorder %s25_s15, 2  ;;  %p158_p2 = scmp.lt.s32.totalorder %s554_s14, 3 }
   0x5   : > { %s628_s15 = smov (%p27_p1, %s25_s15), 0  ;;  %p159_p3 = pnand %p478_p0, %p158_p2 }
   0x6   : > { %p191_p4 = scmp.lt.s32.totalorder (!%p159_p3), %s546_s12, 1  ;;  %v227_v0 = vld [vmem:[%s623_s2] sm:$0xff] (!%p159_p3)  ;;  %v556_v1 = vmov (!%p159_p3), 0.0   ;;  %v557_v2 = vmov (!%p159_p3), 0   ;;  %vm233_vm0 = vcmask (!%p159_p3), 261120  }
   0x7   : > { %162 = sbr.rel (%p159_p3) target bundleno = 248 (0xf8), region = 32  ;;  %301 = vmatprep.mubr.f32.mxu0 (!%p159_p3), %v556_v1  ;;  %372 = vmatprep.mubr.f32.mxu1 (!%p159_p3), %v556_v1  ;;  %v210_v27 = vld [vmem:[%s622_s1] sm:$0xff] (!%p159_p3) }
   0x8   : > { %531 = vset.pattern.permute.xlu0 (!%p159_p3), %v557_v2 }
   0x9   : > { %230 = vperm.xlu0 (!%p159_p3), %531, %v227_v0  }
   0xe   : > { %s630_s12 = smov (!%p191_p4, %s546_s12), 1 }
   0xf   : > { %s487_s18 = sshll.u32 %s630_s12, 7  ;;  %s488_s24 = sshll.u32 %s630_s12, 5 }
  0x10   : > { %s198_s21 = scalar_lea.vmem %s621_s0, %s487_s18  ;;  %s208_s27 = scalar_lea.vmem %s624_s3, %s488_s24 }
  0x11   : > { %v212_v3 = vld [vmem:[%s198_s21 + $0x8] sm:$0xff]  ;;  %v214_v5 = vld [vmem:[%s198_s21 + $0x18] sm:$0xff]  ;;  %v211_v8 = vld [vmem:[%s198_s21] sm:$0xff] }
  0x12   : > { %v216_v4 = vld [vmem:[%s198_s21 + $0x28] sm:$0xff]  ;;  %v218_v7 = vld [vmem:[%s198_s21 + $0x38] sm:$0xff]  ;;  %v215_v9 = vld [vmem:[%s198_s21 + $0x20] sm:$0xff] }
  0x13   : > { %v489_v6 = vpack.c.bf16 %v216_v4, %v212_v3  ;;  %v497_v10 = vpack.c.bf16 %v218_v7, %v214_v5  ;;  %v491_v11 = vpack.c.bf16 %v215_v9, %v211_v8  ;;  %v213_v12 = vld [vmem:[%s198_s21 + $0x10] sm:$0xff]  ;;  %v220_v14 = vld [vmem:[%s198_s21 + $0x48] sm:$0xff]  ;;  %v222_v17 = vld [vmem:[%s198_s21 + $0x58] sm:$0xff] }
  0x14   : > { %v217_v13 = vld [vmem:[%s198_s21 + $0x30] sm:$0xff]  ;;  %v224_v16 = vld [vmem:[%s198_s21 + $0x68] sm:$0xff]  ;;  %v226_v18 = vld [vmem:[%s198_s21 + $0x78] sm:$0xff] }
  0x15   : > { %490 = vmatprep.subr.bf16.mxu0 %v489_v6  ;;  %v499_v15 = vpack.c.bf16 %v217_v13, %v213_v12  ;;  %498 = vmatprep.subr.bf16.mxu1 %v497_v10  ;;  %v493_v19 = vpack.c.bf16 %v224_v16, %v220_v14  ;;  %v501_v20 = vpack.c.bf16 %v226_v18, %v222_v17  ;;  %v219_v21 = vld [vmem:[%s198_s21 + $0x40] sm:$0xff]  ;;  %v221_v23 = vld [vmem:[%s198_s21 + $0x50] sm:$0xff] }
  0x16   : > { %492 = vmatpush1.bf16.msra.mxu0 %v491_v11  ;;  %v223_v22 = vld [vmem:[%s198_s21 + $0x60] sm:$0xff]  ;;  %v225_v25 = vld [vmem:[%s198_s21 + $0x70] sm:$0xff] }
  0x17   : > { %500 = vmatpush1.bf16.msra.mxu1 %v499_v15  ;;  %v495_v24 = vpack.c.bf16 %v223_v22, %v219_v21  ;;  %494 = vmatprep.subr.bf16.mxu0 %v493_v19  ;;  %v503_v26 = vpack.c.bf16 %v225_v25, %v221_v23 }
  0x18   : > { %502 = vmatprep.subr.bf16.mxu1 %v501_v20 }
  0x1a   : > { %496 = vmatpush1.bf16.msra.mxu0 %v495_v24 }
  0x1b   : > { %504 = vmatpush1.bf16.msra.mxu1 %v503_v26 }
  0x1d   : > { %483 = vmatmul.mubr.msk.f32.vlgmr.msra.gmra.mrb[0].mxu0 %vm233_vm0, %v210_v27 }
  0x1e   : > { %484 = vmatmul.mubr.msk.f32.vlgmr.msra.gmra.mrb[0].mxu1 %vm233_vm0, %v210_v27 }
  0x88   : > { %v231_v28 = vpop.permute.xlu0 %230 }
  0xf0   : > { %v303_v29 = vpop.f32.mrb[0].mxu0 }
  0xf1   : > { %v304_v30 = vadd.f32 %v303_v29, %v231_v28  ;;  %v374_v31 = vpop.f32.mrb[0].mxu1  ;;  %v305_v32 = vpop.f32.mrb[1].mxu0 }
  0xf2   : > { %v375_v33 = vadd.f32 %v374_v31, %v231_v28  ;;  %v306_v34 = vadd.f32 %v305_v32, %v231_v28  ;;  %v376_v35 = vpop.f32.mrb[1].mxu1 }
  0xf3   : > { %v379_v36 = vmax.f32 %v304_v30, 0.0  ;;  %v377_v37 = vadd.f32 %v376_v35, %v231_v28 }
  0xf4   : > { %v381_v38 = vmax.f32 %v375_v33, 0.0  ;;  %v380_v39 = vmax.f32 %v306_v34, 0.0 }
  0xf5   : > { %383 = vst [vmem:[%s208_s27] sm:$0xff] %v379_v36  ;;  %v382_v40 = vmax.f32 %v377_v37, 0.0 }
  0xf6   : > { %385 = vst [vmem:[%s208_s27 + $0x10] sm:$0xff] %v381_v38  ;;  %384 = vst [vmem:[%s208_s27 + $0x8] sm:$0xff] %v380_v39 }
  0xf7   : > { %386 = vst [vmem:[%s208_s27 + $0x18] sm:$0xff] %v382_v40 }
  0xf8 PF: > { %s13_s14 = sadd.s32 1, %s554_s14   ;;  %s625_s12 = smov %s550_s13 }
  0xf9   : > { %p10_p5 = scmp.ge.s32.totalorder %s13_s14, 4   ;;  %s626_s13 = smov %s628_s15 }
  0xfb   :  { %12 = sbr.rel (!%p10_p5) target bundleno = 2 (0x2), region = 62 }

</bundles_post_ra>
